<compile_context>
chip_gen: v7x
topology: tpu7x:2x2x1
jax: 0.10.0
libtpu: 0.0.40
codegen_flags: <defaults>
</compile_context>

<pallas_src>
import functools

import jax
import jax.numpy as jnp
from jax.experimental import pallas as pl
from jax.experimental.pallas import tpu as pltpu


def _round_up(x, m):
    return (x + m - 1) // m * m


def _round_down(x, m):
    return (x // m) * m


def _vmem_capacity_bytes():
    try:
        info = pltpu.get_tpu_info()
        cap = getattr(info, "vmem_capacity_bytes", None)
        if cap:
            return int(cap)
    except Exception:
        pass
    return 64 * 1024 * 1024   # conservative (v7x-sized) fallback


def _center_stats_kernel(feat_ref, tgt_ref, pmk_ref,
                         sums_ref, cnts_ref, psq_ref,
                         *, n, tn, tiles_per_split, num_classes, ragged):
    """Accumulate per-class statistics over one batch tile.

    sums_ref : (2C, D) f32  rows [0,C)  = sum of ALL   features of class c
                            rows [C,2C) = sum of CLEAN features of class c
    cnts_ref : (2C, 1) f32  matching row counts
    psq_ref  : (1, D)  f32  sum over POISONED rows of f*f (per feature dim)
    """
    inner = pl.program_id(1)

    @pl.when(inner == 0)
    def _init():
        sums_ref[...] = jnp.zeros_like(sums_ref)
        cnts_ref[...] = jnp.zeros_like(cnts_ref)
        psq_ref[...] = jnp.zeros_like(psq_ref)

    feats = feat_ref[...]                     # (TN, D), input dtype (f32/bf16)
    tgts = tgt_ref[...]                       # (1, TN) i32   (padded rows = -1)
    pmk = pmk_ref[...]                        # (1, TN) f32   (padded rows = 0)

    if ragged:
        # The last feature tile may read past N (unspecified bits); zero those
        # rows so the 0-weights below cannot be poisoned by stray NaN/Inf.
        tile_idx = pl.program_id(0) * tiles_per_split + inner
        row = jax.lax.broadcasted_iota(jnp.int32, (tn, 1), 0) + tile_idx * tn
        feats = jnp.where(row < n, feats, jnp.zeros_like(feats))

    c = num_classes
    # Stacked selection matrix W (2C, TN) built directly from iota (no concat,
    # no separate poisoned copy).  Mask math stays in f32 (v5e-friendly); the
    # only cast is the single cast of W to the feature dtype for the MXU.
    rows2 = jax.lax.broadcasted_iota(jnp.int32, (2 * c, tn), 0)
    in_clean_half = rows2 >= c
    cls = rows2 - jnp.where(in_clean_half, c, 0)
    sel = cls == tgts                                              # (2C, TN)
    clean_l = (pmk == 0.0).astype(jnp.float32)                     # (1, TN)
    w = jnp.where(sel, jnp.where(in_clean_half, clean_l, 1.0), 0.0)

    # Per-class counts (cheap lane reduction, rides in the XLU slot).
    cnts_ref[...] += jnp.sum(w, axis=1, keepdims=True)             # (2C, 1)

    # One stacked (2C,TN)x(TN,D) MXU matmul, f32 accumulation.
    sums_ref[...] += jnp.dot(w.astype(feats.dtype), feats,
                             preferred_element_type=jnp.float32)   # (2C, D)

    # Poisoned sum-of-squares as a (1, D) vector via the MXU; square in f32
    # so bf16 feature streams do not lose mantissa in the square.
    f32 = feats.astype(jnp.float32)
    poison_l = 1.0 - clean_l                                        # (1, TN)
    psq_ref[...] += jnp.dot(poison_l, f32 * f32,
                            preferred_element_type=jnp.float32)     # (1, D)

    # TODO(synk): for num_classes >= ~256, block the class dimension (inner
    # fori_loop over C-blocks of the selection matrix) to bound live vregs.


def center_loss_forward(features, targets, pmarks, center, momentum=0.99,
                        block_rows=None, num_splits=None):
    """CenterLoss forward. Returns (scalar loss, updated centers f32)."""
    n, d = features.shape
    c, dc = center.shape
    assert d == dc

    itemsize = jnp.dtype(features.dtype).itemsize

    # ---- row-tile size: byte-targeted (~2 MiB / feature tile), layout safe --
    if block_rows is not None:
        tn_target = max(int(block_rows), 8)
    else:
        tn_target = (2 * 1024 * 1024) // max(d * itemsize, 1)
        tn_target = min(max(tn_target, 128), 8192)
    if n <= tn_target:
        tn = _round_up(max(n, 1), 8)          # single tile covers the batch
    else:
        tn = max(_round_down(tn_target, 128), 128)

    total_tiles = pl.cdiv(n, tn)
    if num_splits is None:
        num_splits = 2 if total_tiles >= 2 else 1   # v7x: one split per TC
    num_splits = max(1, min(int(num_splits), total_tiles))
    tps = pl.cdiv(total_tiles, num_splits)          # tiles per split
    grid_tiles = num_splits * tps
    grid_rows = grid_tiles * tn
    ragged = grid_rows != n

    # Only the tiny 1-D side inputs are padded host-side; the (N, D) feature
    # matrix is streamed unpadded (ragged last tile masked in-kernel).
    tgt = targets.astype(jnp.int32)
    pmk = pmarks.astype(jnp.float32)
    pad = grid_rows - n
    if pad:
        tgt = jnp.pad(tgt, (0, pad), constant_values=-1)
        pmk = jnp.pad(pmk, (0, pad), constant_values=0.0)
    tgt_lane = tgt.reshape(1, grid_rows)
    pmk_lane = pmk.reshape(1, grid_rows)

    last_tile = total_tiles - 1

    def feat_map(s, i):
        # Clamp so fully-out-of-range tiles (split padding) re-read the last
        # real tile; their contribution is masked to zero in the kernel.
        return (jnp.minimum(s * tps + i, last_tile), 0)

    # ---- VMEM budget: derived from actual footprint, capped to the chip ----
    need = (2 * tn * d * itemsize                        # dbl-buffered feats
            + 2 * tn * 8                                 # targets + pmarks
            + 2 * (2 * c * d + 2 * c + d) * 4            # output accumulators
            + (4 << 20))                                 # headroom
    vmem_limit = int(min(max(need, 16 << 20),
                         int(0.75 * _vmem_capacity_bytes())))

    kernel = functools.partial(
        _center_stats_kernel, n=n, tn=tn, tiles_per_split=tps,
        num_classes=c, ragged=ragged)

    sums, cnts, psq = pl.pallas_call(
        kernel,
        out_shape=(jax.ShapeDtypeStruct((num_splits, 2 * c, d), jnp.float32),
                   jax.ShapeDtypeStruct((num_splits, 2 * c, 1), jnp.float32),
                   jax.ShapeDtypeStruct((num_splits, 1, d), jnp.float32)),
        grid=(num_splits, tps),
        in_specs=[
            pl.BlockSpec((tn, d), feat_map),                        # features
            pl.BlockSpec((1, tn), lambda s, i: (0, s * tps + i)),   # targets
            pl.BlockSpec((1, tn), lambda s, i: (0, s * tps + i)),   # pmarks
        ],
        out_specs=(
            pl.BlockSpec((None, 2 * c, d), lambda s, i: (s, 0, 0)),
            pl.BlockSpec((None, 2 * c, 1), lambda s, i: (s, 0, 0)),
            pl.BlockSpec((None, 1, d), lambda s, i: (s, 0, 0)),
        ),
        compiler_params=pltpu.CompilerParams(
            dimension_semantics=("parallel", "arbitrary"),
            vmem_limit_bytes=vmem_limit),
    )(features, tgt_lane, pmk_lane)

    # ---- tiny finalize in plain JAX (EMA center update + algebraic loss) ----
    sums = jnp.sum(sums, axis=0)              # (2C, D)
    cnts = jnp.sum(cnts, axis=0)              # (2C, 1)
    psq = jnp.sum(psq, axis=(0, 1))           # (D,)

    all_sum, clean_sum = sums[:c], sums[c:]
    all_cnt, clean_cnt = cnts[:c], cnts[c:]
    p_sum = all_sum - clean_sum
    p_cnt = all_cnt - clean_cnt

    center_f32 = center.astype(jnp.float32)
    class_mean = clean_sum / jnp.maximum(clean_cnt, 1.0)
    new_center = jnp.where(clean_cnt > 0.0,
                           center_f32 * momentum + class_mean * (1.0 - momentum),
                           center_f32)

    cnt_p = jnp.sum(p_cnt)
    sumsq_p = jnp.sum(psq)
    cross = jnp.sum(p_sum * new_center)
    cnorm = jnp.sum(p_cnt * jnp.sum(new_center * new_center, axis=1,
                                    keepdims=True))
    num = jnp.maximum(sumsq_p - 2.0 * cross + cnorm, 0.0)
    loss = jnp.where(cnt_p > 0.0,
                     num / (jnp.maximum(cnt_p, 1.0) * float(d)), 0.0)
    return loss, new_center


def _reference(features, targets, pmarks, center, momentum=0.99):
    """Pure-JAX reference mirroring the PyTorch forward."""
    c, d = center.shape
    clean = pmarks == 0
    new_center = center
    for i in range(c):
        m = clean & (targets == i)
        cnt = jnp.sum(m)
        mean_i = jnp.sum(jnp.where(m[:, None], features, 0.0),
                         axis=0) / jnp.maximum(cnt, 1)
        new_center = new_center.at[i].set(
            jnp.where(cnt > 0, center[i] * momentum + mean_i * (1 - momentum),
                      center[i]))
    poison = ~clean
    cnt_p = jnp.sum(poison)
    diff = features - new_center[targets]
    sum_sq = jnp.sum(jnp.where(poison[:, None], diff * diff, 0.0))
    loss = jnp.where(cnt_p > 0, sum_sq / (cnt_p * d), 0.0)
    return loss, new_center


if __name__ == "__main__":
    key = jax.random.PRNGKey(0)
    k1, k2, k3, k4, k5, k6 = jax.random.split(key, 6)

    momentum = 0.99
    D, C = 32, 10

    # --- small single-tile case ----------------------------------------------
    N = 8
    features = jax.random.normal(k1, (N, D), dtype=jnp.float32)
    targets = jax.random.randint(k2, (N,), 0, C, dtype=jnp.int32)
    pmarks = (jax.random.uniform(k3, (N,)) > 0.5).astype(jnp.float32)
    center0 = jnp.zeros((C, D), dtype=jnp.float32)   # self.center None -> zeros

    loss, new_center = center_loss_forward(features, targets, pmarks, center0,
                                           momentum=momentum)
    jax.block_until_ready((loss, new_center))
    ref_loss, ref_center = _reference(features, targets, pmarks, center0,
                                      momentum)
    assert jnp.allclose(loss, ref_loss, atol=1e-5, rtol=1e-5)
    assert jnp.allclose(new_center, ref_center, atol=1e-5, rtol=1e-5)

    # --- multi-tile / 2-split / ragged-last-tile streamed case ---------------
    N2 = 300
    features2 = jax.random.normal(k4, (N2, D), dtype=jnp.float32)
    targets2 = jax.random.randint(k5, (N2,), 0, C, dtype=jnp.int32)
    pmarks2 = (jax.random.uniform(k6, (N2,)) > 0.5).astype(jnp.float32)
    center1 = 0.1 * jax.random.normal(key, (C, D), dtype=jnp.float32)

    loss2, new_center2 = center_loss_forward(features2, targets2, pmarks2,
                                             center1, momentum=momentum,
                                             block_rows=128, num_splits=2)
    jax.block_until_ready((loss2, new_center2))
    ref_loss2, ref_center2 = _reference(features2, targets2, pmarks2, center1,
                                        momentum)
    assert jnp.allclose(loss2, ref_loss2, atol=1e-4, rtol=1e-4)
    assert jnp.allclose(new_center2, ref_center2, atol=1e-5, rtol=1e-5)

    # --- bf16 feature stream (bf16 MXU matmuls, f32 accumulation) ------------
    features3 = features2.astype(jnp.bfloat16)
    loss3, new_center3 = center_loss_forward(features3, targets2, pmarks2,
                                             center1, momentum=momentum,
                                             block_rows=128)
    jax.block_until_ready((loss3, new_center3))
    ref_loss3, ref_center3 = _reference(features3.astype(jnp.float32), targets2,
                                        pmarks2, center1, momentum)
    assert jnp.allclose(loss3, ref_loss3, atol=1e-2, rtol=1e-2)
    assert jnp.allclose(new_center3, ref_center3, atol=1e-2, rtol=1e-2)

    print("KERNEL_OK")
</pallas_src>

<mosaic_0001>
module attributes {stable_mosaic.version = 11 : i64} {
  func.func @_center_stats_kernel(%arg0: i32, %arg1: i32, %arg2: memref<8x32xf32, #tpu.memory_space<vmem>>, %arg3: memref<1x8xi32, #tpu.memory_space<vmem>>, %arg4: memref<1x8xf32, #tpu.memory_space<vmem>>, %arg5: memref<1x20x32xf32, #tpu.memory_space<vmem>>, %arg6: memref<1x20x1xf32, #tpu.memory_space<vmem>>, %arg7: memref<1x1x32xf32, #tpu.memory_space<vmem>>) attributes {dimension_semantics = [#tpu.dimension_semantics<parallel>, #tpu.dimension_semantics<arbitrary>], iteration_bounds = array<i64: 1, 1>, scalar_prefetch = 0 : i64, scratch_operands = 0 : i64, tpu.core_type = #tpu.core_type<tc>, window_params = [{transform_indices = @transform_0, window_bounds = array<i64: 8, 32>}, {transform_indices = @transform_1, window_bounds = array<i64: 1, 8>}, {transform_indices = @transform_2, window_bounds = array<i64: 1, 8>}, {transform_indices = @transform_3, window_bounds = array<i64: 1, 20, 32>}, {transform_indices = @transform_4, window_bounds = array<i64: 1, 20, 1>}, {transform_indices = @transform_5, window_bounds = array<i64: 1, 1, 32>}]} {
    %c0_i32 = arith.constant 0 : i32
    %0 = arith.cmpi eq, %arg1, %c0_i32 : i32
    %1 = arith.extui %0 : i1 to i32
    %c0_i32_0 = arith.constant 0 : i32
    %2 = arith.cmpi ne, %1, %c0_i32_0 : i32
    scf.if %2 {
      %cst_32 = arith.constant 0.000000e+00 : f32
      %50 = vector.broadcast %cst_32 : f32 to vector<20x32xf32>
      %c0_33 = arith.constant 0 : index
      %c0_34 = arith.constant 0 : index
      %c0_35 = arith.constant 0 : index
      %51 = vector.load %arg5[%c0_33, %c0_34, %c0_35] : memref<1x20x32xf32, #tpu.memory_space<vmem>>, vector<1x20x32xf32>
      %52 = vector.shape_cast %51 : vector<1x20x32xf32> to vector<20x32xf32>
      %53 = vector.shape_cast %50 : vector<20x32xf32> to vector<1x20x32xf32>
      tpu.vector_store %arg5[%c0_33, %c0_34, %c0_35], %53 {strides = array<i32>} : memref<1x20x32xf32, #tpu.memory_space<vmem>>, vector<1x20x32xf32>,
      %cst_36 = arith.constant 0.000000e+00 : f32
      %54 = vector.broadcast %cst_36 : f32 to vector<20x1xf32>
      %c0_37 = arith.constant 0 : index
      %c0_38 = arith.constant 0 : index
      %c0_39 = arith.constant 0 : index
      %55 = vector.load %arg6[%c0_37, %c0_38, %c0_39] : memref<1x20x1xf32, #tpu.memory_space<vmem>>, vector<1x20x1xf32>
      %56 = vector.shape_cast %55 : vector<1x20x1xf32> to vector<20x1xf32>
      %57 = vector.shape_cast %54 : vector<20x1xf32> to vector<1x20x1xf32>
      tpu.vector_store %arg6[%c0_37, %c0_38, %c0_39], %57 {strides = array<i32>} : memref<1x20x1xf32, #tpu.memory_space<vmem>>, vector<1x20x1xf32>,
      %cst_40 = arith.constant 0.000000e+00 : f32
      %58 = vector.broadcast %cst_40 : f32 to vector<1x32xf32>
      %c0_41 = arith.constant 0 : index
      %c0_42 = arith.constant 0 : index
      %c0_43 = arith.constant 0 : index
      %59 = vector.load %arg7[%c0_41, %c0_42, %c0_43] : memref<1x1x32xf32, #tpu.memory_space<vmem>>, vector<1x1x32xf32>
      %60 = vector.shape_cast %59 : vector<1x1x32xf32> to vector<1x32xf32>
      %61 = vector.shape_cast %58 : vector<1x32xf32> to vector<1x1x32xf32>
      tpu.vector_store %arg7[%c0_41, %c0_42, %c0_43], %61 {strides = array<i32>} : memref<1x1x32xf32, #tpu.memory_space<vmem>>, vector<1x1x32xf32>,
    } else {
    }
    %c0 = arith.constant 0 : index
    %c0_1 = arith.constant 0 : index
    %3 = vector.load %arg2[%c0, %c0_1] : memref<8x32xf32, #tpu.memory_space<vmem>>, vector<8x32xf32>
    %c0_2 = arith.constant 0 : index
    %c0_3 = arith.constant 0 : index
    %4 = vector.load %arg3[%c0_2, %c0_3] : memref<1x8xi32, #tpu.memory_space<vmem>>, vector<1x8xi32>
    %c0_4 = arith.constant 0 : index
    %c0_5 = arith.constant 0 : index
    %5 = vector.load %arg4[%c0_4, %c0_5] : memref<1x8xf32, #tpu.memory_space<vmem>>, vector<1x8xf32>
    %6 = tpu.iota {dimensions = array<i32: 0>} : vector<20x8xi32>
    %c10_i32 = arith.constant 10 : i32
    %7 = vector.broadcast %c10_i32 : i32 to vector<20x8xi32>
    %8 = arith.cmpi sge, %6, %7 : vector<20x8xi32>
    %c10_i32_6 = arith.constant 10 : i32
    %c0_i32_7 = arith.constant 0 : i32
    %9 = vector.broadcast %c10_i32_6 : i32 to vector<20x8xi32>
    %10 = vector.broadcast %c0_i32_7 : i32 to vector<20x8xi32>
    %11 = arith.select %8, %9, %10 : vector<20x8xi1>, vector<20x8xi32>
    %12 = arith.subi %6, %11 : vector<20x8xi32>
    %13 = vector.broadcast %4 : vector<1x8xi32> to vector<20x8xi32>
    %14 = arith.cmpi eq, %12, %13 : vector<20x8xi32>
    %cst = arith.constant 0.000000e+00 : f32
    %15 = vector.broadcast %cst : f32 to vector<1x8xf32>
    %16 = arith.cmpf oeq, %5, %15 : vector<1x8xf32>
    %17 = arith.extui %16 : vector<1x8xi1> to vector<1x8xi32>
    %18 = arith.sitofp %17 : vector<1x8xi32> to vector<1x8xf32>
    %cst_8 = arith.constant 1.000000e+00 : f32
    %19 = vector.shape_cast %18 : vector<1x8xf32> to vector<1x8xf32>
    %20 = vector.broadcast %19 : vector<1x8xf32> to vector<20x8xf32>
    %21 = vector.broadcast %cst_8 : f32 to vector<20x8xf32>
    %22 = arith.select %8, %20, %21 : vector<20x8xi1>, vector<20x8xf32>
    %cst_9 = arith.constant 0.000000e+00 : f32
    %23 = vector.broadcast %cst_9 : f32 to vector<20x8xf32>
    %24 = arith.select %14, %22, %23 : vector<20x8xi1>, vector<20x8xf32>
    %c0_10 = arith.constant 0 : index
    %c0_11 = arith.constant 0 : index
    %c0_12 = arith.constant 0 : index
    %25 = vector.load %arg6[%c0_10, %c0_11, %c0_12] : memref<1x20x1xf32, #tpu.memory_space<vmem>>, vector<1x20x1xf32>
    %26 = vector.shape_cast %25 : vector<1x20x1xf32> to vector<20x1xf32>
    %cst_13 = arith.constant dense<0.000000e+00> : vector<20xf32>
    %27 = vector.multi_reduction <add>, %24, %cst_13 [1] : vector<20x8xf32> to vector<20xf32>
    %28 = vector.shape_cast %27 : vector<20xf32> to vector<20x1xf32>
    %29 = arith.addf %26, %28 : vector<20x1xf32>
    %c0_14 = arith.constant 0 : index
    %c0_15 = arith.constant 0 : index
    %c0_16 = arith.constant 0 : index
    %30 = vector.load %arg6[%c0_14, %c0_15, %c0_16] : memref<1x20x1xf32, #tpu.memory_space<vmem>>, vector<1x20x1xf32>
    %31 = vector.shape_cast %30 : vector<1x20x1xf32> to vector<20x1xf32>
    %32 = vector.shape_cast %29 : vector<20x1xf32> to vector<1x20x1xf32>
    tpu.vector_store %arg6[%c0_14, %c0_15, %c0_16], %32 {strides = array<i32>} : memref<1x20x1xf32, #tpu.memory_space<vmem>>, vector<1x20x1xf32>,
    %c0_17 = arith.constant 0 : index
    %c0_18 = arith.constant 0 : index
    %c0_19 = arith.constant 0 : index
    %33 = vector.load %arg5[%c0_17, %c0_18, %c0_19] : memref<1x20x32xf32, #tpu.memory_space<vmem>>, vector<1x20x32xf32>
    %34 = vector.shape_cast %33 : vector<1x20x32xf32> to vector<20x32xf32>
    %cst_20 = arith.constant dense<0.000000e+00> : vector<20x32xf32>
    %35 = tpu.matmul %24, %3, %cst_20 {dimension_numbers = #tpu.dot_dimension_numbers<[1], [0], [0], [1], [0, 0, 1, 1], [], []>} : vector<20x8xf32>, vector<8x32xf32>, vector<20x32xf32> -> vector<20x32xf32>
    %36 = arith.addf %34, %35 : vector<20x32xf32>
    %c0_21 = arith.constant 0 : index
    %c0_22 = arith.constant 0 : index
    %c0_23 = arith.constant 0 : index
    %37 = vector.load %arg5[%c0_21, %c0_22, %c0_23] : memref<1x20x32xf32, #tpu.memory_space<vmem>>, vector<1x20x32xf32>
    %38 = vector.shape_cast %37 : vector<1x20x32xf32> to vector<20x32xf32>
    %39 = vector.shape_cast %36 : vector<20x32xf32> to vector<1x20x32xf32>
    tpu.vector_store %arg5[%c0_21, %c0_22, %c0_23], %39 {strides = array<i32>} : memref<1x20x32xf32, #tpu.memory_space<vmem>>, vector<1x20x32xf32>,
    %cst_24 = arith.constant 1.000000e+00 : f32
    %40 = vector.broadcast %cst_24 : f32 to vector<1x8xf32>
    %41 = arith.subf %40, %18 : vector<1x8xf32>
    %c0_25 = arith.constant 0 : index
    %c0_26 = arith.constant 0 : index
    %c0_27 = arith.constant 0 : index
    %42 = vector.load %arg7[%c0_25, %c0_26, %c0_27] : memref<1x1x32xf32, #tpu.memory_space<vmem>>, vector<1x1x32xf32>
    %43 = vector.shape_cast %42 : vector<1x1x32xf32> to vector<1x32xf32>
    %44 = arith.mulf %3, %3 : vector<8x32xf32>
    %cst_28 = arith.constant dense<0.000000e+00> : vector<1x32xf32>
    %45 = tpu.matmul %41, %44, %cst_28 {dimension_numbers = #tpu.dot_dimension_numbers<[1], [0], [0], [1], [0, 0, 1, 1], [], []>} : vector<1x8xf32>, vector<8x32xf32>, vector<1x32xf32> -> vector<1x32xf32>
    %46 = arith.addf %43, %45 : vector<1x32xf32>
    %c0_29 = arith.constant 0 : index
    %c0_30 = arith.constant 0 : index
    %c0_31 = arith.constant 0 : index
    %47 = vector.load %arg7[%c0_29, %c0_30, %c0_31] : memref<1x1x32xf32, #tpu.memory_space<vmem>>, vector<1x1x32xf32>
    %48 = vector.shape_cast %47 : vector<1x1x32xf32> to vector<1x32xf32>
    %49 = vector.shape_cast %46 : vector<1x32xf32> to vector<1x1x32xf32>
    tpu.vector_store %arg7[%c0_29, %c0_30, %c0_31], %49 {strides = array<i32>} : memref<1x1x32xf32, #tpu.memory_space<vmem>>, vector<1x1x32xf32>,
    return
  }
  func.func @transform_0(%arg0: i32, %arg1: i32) -> (i32, i32) {
    %c1_i32 = arith.constant 1 : i32
    %0 = arith.muli %arg0, %c1_i32 : i32
    %1 = arith.addi %0, %arg1 : i32
    %c0_i32 = arith.constant 0 : i32
    %2 = arith.minsi %1, %c0_i32 : i32
    %c0_i32_0 = arith.constant 0 : i32
    %c0_i32_1 = arith.constant 0 : i32
    return %2, %c0_i32_0 : i32, i32
  }
  func.func @transform_1(%arg0: i32, %arg1: i32) -> (i32, i32) {
    %c1_i32 = arith.constant 1 : i32
    %0 = arith.muli %arg0, %c1_i32 : i32
    %1 = arith.addi %0, %arg1 : i32
    %c0_i32 = arith.constant 0 : i32
    %c0_i32_0 = arith.constant 0 : i32
    return %c0_i32, %1 : i32, i32
  }
  func.func @transform_2(%arg0: i32, %arg1: i32) -> (i32, i32) {
    %c1_i32 = arith.constant 1 : i32
    %0 = arith.muli %arg0, %c1_i32 : i32
    %1 = arith.addi %0, %arg1 : i32
    %c0_i32 = arith.constant 0 : i32
    %c0_i32_0 = arith.constant 0 : i32
    return %c0_i32, %1 : i32, i32
  }
  func.func @transform_3(%arg0: i32, %arg1: i32) -> (i32, i32, i32) {
    %c0_i32 = arith.constant 0 : i32
    %c0_i32_0 = arith.constant 0 : i32
    %c0_i32_1 = arith.constant 0 : i32
    return %arg0, %c0_i32, %c0_i32_0 : i32, i32, i32
  }
  func.func @transform_4(%arg0: i32, %arg1: i32) -> (i32, i32, i32) {
    %c0_i32 = arith.constant 0 : i32
    %c0_i32_0 = arith.constant 0 : i32
    %c0_i32_1 = arith.constant 0 : i32
    return %arg0, %c0_i32, %c0_i32_0 : i32, i32, i32
  }
  func.func @transform_5(%arg0: i32, %arg1: i32) -> (i32, i32, i32) {
    %c0_i32 = arith.constant 0 : i32
    %c0_i32_0 = arith.constant 0 : i32
    %c0_i32_1 = arith.constant 0 : i32
    return %arg0, %c0_i32, %c0_i32_0 : i32, i32, i32
  }
}

</mosaic_0001>

<bundles_post_ra>
// kernel: tpu_custom_call.1
= control target key start
LH: loop header
LB: loop body
LE: loop exit
PB: predicated region body
PF: predicated region fallthrough
CT: control target
= control target key end

     0   :  { %11 = vsyncpa [#allocation3], 0  ;;  %s579_s0 = inlined_call_operand.hbm [shape: f32[8,32], index: 0, kind: input, shape index: {}]   ;;  %s580_s1 = inlined_call_operand.vmem [shape: s32[1,8], index: 1, kind: input, shape index: {}]   ;;  %s581_s2 = inlined_call_operand.vmem [shape: f32[1,8], index: 2, kind: input, shape index: {}]   ;;  %s582_s3 = inlined_call_operand.vmem [shape: f32[1,20,32], index: 3, kind: output, shape index: {0}]   ;;  %s583_s4 = inlined_call_operand.vmem [shape: f32[1,20,1], index: 4, kind: output, shape index: {1}]   ;;  %s584_s5 = inlined_call_operand.hbm [shape: f32[1,1,32], index: 5, kind: output, shape index: {2}]  }
   0x1   :  { %12 = vsyncpa [#allocation4], 0  ;;  %s436_s18 = smov [#allocation2]   ;;  %s388_s22 = scalar_lea.hbm %s579_s0, 128 }
   0x2   :  { %s24_s19 = sshll.u32 %s436_s18, 4  ;;  %p389_p0 = scmp.ne.s32.totalorder %s579_s0, %s388_s22  ;;  %s25_s19 = int_to_ptr.vmem [resolvable:$true] %s24_s19 }
   0x3   :  { %p392_p1 = scmp.lt.u32.totalorder %s388_s22, %s579_s0 }
   0x5   :  { %p394_p2 = pnand %p392_p1, %p389_p0 }
   0x7   :  { %397 = shalt.err (!%p394_p2)
}
   0x8   :  { %s398_s27 = scalar_lea.vmem %s25_s19, 128  ;;  %p403_p4 = scmp.lt.s32.totalorder %s25_s19, %s25_s19 }
   0x9   :  { %p399_p3 = scmp.ne.s32.totalorder %s25_s19, %s398_s27  ;;  %p404_p5 = scmp.lt.s32.totalorder %s398_s27, %s398_s27 }
   0xb   :  { %p405_p6 = por %p404_p5, %p403_p4 }
   0xd   :  { %p406_p7 = pnand %p405_p6, %p399_p3 }
   0xf   :  { %409 = shalt.err (!%p406_p7)
}
  0x10   :  { %27 = dma.hbm_to_vmem [thread:$0]  %s579_s0, 128, %s25_s19, [#allocation3]  }
  0x11   :  { %432 = dma.done.wait [#allocation3], 128  }
  0x12   :  { %433 = vsyncadd [#allocation3], 4294967168  ;;  %v85_v0 = vlaneseq  ;;  %v437_v1 = vmov 0.0   ;;  %vm70_vm0 = vcmask 261120   ;;  %vm438_vm1 = vmmov 0   ;;  %v82_v7 = vld [vmem:[#allocation2] sm:$0xff] }
  0x13   :  { %381 = vmatprep.subr.mxu1 %v437_v1  ;;  %365 = vmatprep.subr.mxu0 %v437_v1  ;;  %71 = vst.msk [vmem:[%s582_s3] sm:$0xff] %vm70_vm0, %v437_v1  ;;  %72 = vst.msk [vmem:[%s582_s3 + $0x8] sm:$0xff] %vm70_vm0, %v437_v1  ;;  %vm123_vm2 = vcmask 64512   ;;  %v353_v8 = vld [vmem:[%s580_s1] ss:$0 sm:$0xff]  ;;  %v439_v10 = vmov 0   ;;  %v244_v15 = vmul.f32 %v82_v7, %v82_v7 }
  0x14   :  { %367 = vmatprep.mubr.msk.f32.mxu0 %vm438_vm1, %v437_v1  ;;  %373 = vmatprep.mubr.msk.f32.mxu1 %vm438_vm1, %v437_v1  ;;  %v86_v2 = vshrl.u32 %v85_v0, 7  ;;  %v84_v9 = vld [vmem:[%s581_s2] sm:$0x1]  ;;  %vm130_vm7 = vcmask 60416   ;;  %vm73_vm9 = vcmask 257024   ;;  %vm75_vm10 = vcmask 7168  }
  0x15   :  { %382 = vmatpush3.msra.mxu1 %v82_v7  ;;  %366 = vmatpush3.msra.mxu0 %v82_v7  ;;  %vm105_vm5 = vcmp.eq.f32.partialorder %v84_v9, 0.0  ;;  %74 = vst.msk [vmem:[%s582_s3 + $0x10] sm:$0xf] %vm73_vm9, %v437_v1  ;;  %vm80_vm11 = vcmask 253952   ;;  %vm78_vm12 = vcmask 3072  }
  0x16   :  { %v88_v3 = vadd.s32 16, %v86_v2  ;;  %v87_v4 = vadd.s32 8, %v86_v2  ;;  %v111_v6 = vsub.s32 0, %v86_v2  ;;  %vm102_vm4 = vcmp.eq.s32.totalorder %v86_v2, %v353_v8  ;;  %376 = vmatprep.subr.mxu1 %v437_v1  ;;  %76 = vst.msk [vmem:[%s583_s4] sm:$0xff] %vm75_vm10, %v437_v1  ;;  %77 = vst.msk [vmem:[%s583_s4 + $0x8] sm:$0xff] %vm75_vm10, %v437_v1 }
  0x17   :  { %v117_v12 = vsel %vm102_vm4, 1.0, %v437_v1  ;;  %v354_v13 = vsel %vm105_vm5, 1.0, %v437_v1  ;;  %81 = vst.msk [vmem:[#allocation5] sm:$0x1] %vm80_vm11, %v437_v1 }
  0x18   :  { %v352_v5 = vadd.s32 4294967286, %v88_v3  ;;  %vm90_vm3 = vcmp.ge.s32.totalorder %v87_v4, 10  ;;  %368 = vmatmul.mubr.msk.f32.vlgmr.msra.gmra.mrb[0].mxu0 %vm123_vm2, %v117_v12  ;;  %v112_v16 = vrot.slane %v354_v13, %v111_v6  ;;  %v124_v17 = vsel %vm123_vm2, %v117_v12, 0.0  ;;  %79 = vst.msk [vmem:[%s583_s4 + $0x10] sm:$0xf] %vm78_vm12, %v437_v1 }
  0x19   :  { %v93_v11 = vsel %vm90_vm3, 10, %v439_v10  ;;  %370 = vmatprep.mubr.msk.f32.mxu0 %vm438_vm1, %v437_v1  ;;  %125 = vadd.xlane.f32.xlu0 %v124_v17  ;;  %v242_v20 = vsub.f32 1.0, %v354_v13 }
  0x1a   :  { %vm104_vm6 = vcmp.eq.s32.totalorder %v352_v5, %v353_v8  ;;  %v96_v14 = vsub.s32 %v87_v4, %v93_v11  ;;  %v115_v19 = vsel %vm90_vm3, %v112_v16, 1.0  ;;  %v142_v33 = vld [vmem:[%s582_s3] sm:$0xff]  ;;  %v143_v39 = vld [vmem:[%s582_s3 + $0x8] sm:$0xff] }
  0x1b   :  { %v119_v18 = vsel %vm104_vm6, %v112_v16, 0.0 }
  0x1c   :  { %vm103_vm8 = vcmp.eq.s32.totalorder %v96_v14, %v353_v8  ;;  %374 = vmatmul.mubr.msk.f32.vlgmr.msra.gmra.mrb[0].mxu1 %vm123_vm2, %v119_v18  ;;  %v131_v22 = vsel %vm130_vm7, %v119_v18, 0.0  ;;  %v144_v36 = vld [vmem:[%s582_s3 + $0x10] sm:$0xf] }
  0x1d   :  { %v118_v21 = vsel %vm103_vm8, %v115_v19, 0.0  ;;  %377 = vmatpush3.msra.mxu1 %v244_v15  ;;  %378 = vmatprep.mubr.msk.f32.mxu1 %vm438_vm1, %v437_v1  ;;  %v120_v24 = vld [vmem:[%s583_s4] sm:$0xff]  ;;  %v121_v28 = vld [vmem:[%s583_s4 + $0x8] sm:$0xff] }
  0x1e   :  { %v127_v23 = vsel %vm123_vm2, %v118_v21, 0.0  ;;  %371 = vmatmul.mubr.msk.f32.gmra.mrb[2].mxu0 %vm123_vm2, %v118_v21  ;;  %132 = vadd.xlane.f32.xlu1 %v131_v22  ;;  %v243_v43 = vld [vmem:[#allocation5] sm:$0x1] }
  0x1f   :  { %128 = vadd.xlane.f32.xlu0 %v127_v23  ;;  %v122_v27 = vld [vmem:[%s583_s4 + $0x10] sm:$0xf] }
  0x20   :  { %379 = vmatmul.mubr.msk.f32.vlgmr.msra.gmra.mrb[2].mxu1 %vm123_vm2, %v242_v20 }
  0xa6   :  { %v126_v25 = vpop.xlane.xlu0 %125 }
  0xa7   :  { %v134_v26 = vadd.f32 %v126_v25, %v120_v24 }
  0xa9   :  { %138 = vst.msk [vmem:[%s583_s4] sm:$0xff] %vm75_vm10, %v134_v26 }
  0xab   :  { %v133_v29 = vpop.xlane.xlu1 %132 }
  0xac   :  { %v136_v30 = vadd.f32 %v133_v29, %v122_v27  ;;  %v129_v31 = vpop.xlane.xlu0 %128 }
  0xad   :  { %v135_v32 = vadd.f32 %v129_v31, %v121_v28 }
  0xae   :  { %141 = vst.msk [vmem:[%s583_s4 + $0x10] sm:$0xf] %vm78_vm12, %v136_v30 }
  0xaf   :  { %139 = vst.msk [vmem:[%s583_s4 + $0x8] sm:$0xff] %vm75_vm10, %v135_v32  ;;  %s440_s4 = smov [#allocation5]  }
  0xb0   :  { %s331_s1 = sshll.u32 %s440_s4, 4  ;;  %s332_s1 = int_to_ptr.vmem [resolvable:$true] %s331_s1 }
  0xb1   :  { %s410_s15 = scalar_lea.vmem %s332_s1, 16  ;;  %s414_s16 = scalar_lea.vmem %s332_s1, 32 }
  0xb2   :  { %p411_p8 = scmp.ne.s32.totalorder %s332_s1, %s410_s15  ;;  %p415_p9 = scmp.lt.s32.totalorder %s332_s1, %s332_s1 }
  0xb3   :  { %p416_p10 = scmp.lt.s32.totalorder %s414_s16, %s410_s15 }
  0xb5   :  { %p417_p11 = por %p416_p10, %p415_p9 }
  0xb7   :  { %p418_p12 = pnand %p417_p11, %p411_p8 }
  0xeb   :  { %v220_v34 = vpop.f32.mrb[0].mxu0 }
  0xec   :  { %v234_v35 = vadd.f32 %v220_v34, %v142_v33  ;;  %v369_v37 = vpop.f32.mrb[1].mxu0 }
  0xee   :  { %238 = vst.msk [vmem:[%s582_s3] sm:$0xff] %vm70_vm0, %v234_v35 }
  0xef   :  { %v230_v38 = vpop.f32.mrb[0].mxu1 }
  0xf0   :  { %v236_v40 = vadd.f32 %v230_v38, %v144_v36  ;;  %v375_v41 = vpop.f32.mrb[1].mxu1 }
  0xf1   :  { %v225_v42 = vpop.f32.mrb[2].mxu0 }
  0xf2   :  { %241 = vst.msk [vmem:[%s582_s3 + $0x10] sm:$0xf] %vm73_vm9, %v236_v40  ;;  %v235_v44 = vadd.f32 %v225_v42, %v143_v39  ;;  %v372_v45 = vpop.f32.mrb[3].mxu0 }
  0xf3   :  { %v314_v46 = vpop.f32.mrb[2].mxu1 }
  0xf4   :  { %239 = vst.msk [vmem:[%s582_s3 + $0x8] sm:$0xff] %vm70_vm0, %v235_v44  ;;  %v318_v47 = vadd.f32 %v314_v46, %v243_v43  ;;  %v380_v48 = vpop.f32.mrb[3].mxu1 }
  0xf6   :  { %320 = vst.msk [vmem:[#allocation5] sm:$0x1] %vm80_vm11, %v318_v47 }
  0xf7   :  { %421 = shalt.err (!%p418_p12)
}
  0xf8   :  { %s422_s19 = scalar_lea.hbm %s584_s5, 16 }
  0xf9   :  { %p423_p13 = scmp.ne.s32.totalorder %s584_s5, %s422_s19  ;;  %p426_p0 = scmp.lt.u32.totalorder %s422_s19, %s584_s5 }
  0xfb   :  { %p428_p1 = pnand %p426_p0, %p423_p13 }
  0xfd   :  { %431 = shalt.err (!%p428_p1)
}
  0xfe   :  { %334 = dma.vmem_to_hbm [thread:$0]  %s332_s1, 16, %s584_s5, [#allocation4]  }
  0xff   :  { %434 = dma.done.wait [#allocation4], 16  }
 0x100   :  { %435 = vsyncadd [#allocation4], 4294967280 }
 0x101   :  { %342 = vsyncpa [#allocation3], 1 }
 0x102   :  { %343 = vsyncpa [#allocation4], 1 }

</bundles_post_ra>
